<compile_context>
chip_gen: v5e
topology: v5e:2x2
jax: 0.10.0
libtpu: 0.0.40
codegen_flags: <defaults>
</compile_context>

<pallas_src>
import jax
import jax.numpy as jnp
from jax.experimental import pallas as pl
from jax.experimental.pallas import tpu as pltpu

_TARGET_BLOCK_BYTES = 4 * 1024 * 1024   # ~4 MiB per block buffer
_VMEM_LIMIT_BYTES = 48 * 1024 * 1024    # fits v7x's 64 MiB physical VMEM with headroom
_LANE = 128


def _vardrop_kernel(x_ref, m_ref, o_ref):
    # Mask block broadcasts along the size-1 time axis of the block; the
    # broadcast is fused into the multiply (single native-dtype vmul per vreg).
    o_ref[...] = x_ref[...] * m_ref[...]


def _round_up(n, m):
    return ((n + m - 1) // m) * m


def variational_dropout(x, dropout, key, *, training=True, batch_first=True,
                        donate_x=False, target_block_bytes=_TARGET_BLOCK_BYTES):
    """Variational (time-shared) dropout.

    x: (B, T, H) if batch_first else (T, B, H), floating dtype.
    Returns x * m / (1 - dropout) with m ~ Bernoulli(1 - dropout) drawn once per
    (batch, hidden) element and shared across the time axis.
    """
    if (not training) or dropout <= 0.0:
        return x
    if x.ndim != 3:
        raise ValueError("expected a rank-3 input (time, batch, hidden layout)")
    if not jnp.issubdtype(x.dtype, jnp.floating):
        raise ValueError("variational_dropout supports floating dtypes only "
                         "(masked scale on integer inputs is ill-defined)")

    keep = 1.0 - float(dropout)
    if batch_first:
        B, T, H = x.shape
        mask_shape = (B, 1, H)
    else:
        T, B, H = x.shape
        mask_shape = (1, B, H)

    # Pre-scaled mask in the input dtype: 1/keep where kept, 0 where dropped.
    # (Rounding 1/keep once to bf16 costs <= 2^-9 relative error — irrelevant
    # for dropout; in exchange the kernel multiply stays in native dtype.)
    bern = jax.random.bernoulli(key, keep, mask_shape)
    mask = jnp.where(bern,
                     jnp.asarray(1.0 / keep, dtype=x.dtype),
                     jnp.asarray(0.0, dtype=x.dtype))

    # Lane-dense last dim: pad H to a multiple of 128 so output stores are
    # unmasked vst. The pad/slice is an extra XLA copy; callers on a hot path
    # should allocate H as a multiple of 128 instead.
    Hp = _round_up(H, _LANE)
    if Hp != H:
        x_call = jnp.pad(x, ((0, 0), (0, 0), (0, Hp - H)))
        mask = jnp.pad(mask, ((0, 0), (0, 0), (0, Hp - H)))
    else:
        x_call = x

    itemsize = jnp.dtype(x.dtype).itemsize
    sublane = max(8, 32 // itemsize)          # 8 f32, 16 bf16/f16
    row_bytes = Hp * itemsize
    cap_rows = max(sublane, target_block_bytes // row_bytes)

    if batch_first:
        # Block (tb, tT, Hp); tT sits on the sublane axis -> multiple of `sublane`
        # or the full extent T.
        tT = T if T <= cap_rows else max(sublane, (cap_rows // sublane) * sublane)
        tb = max(1, min(B, cap_rows // tT))
        # Guarantee >= 2 parallel grid steps so both v7x TensorCores get work.
        if pl.cdiv(B, tb) * pl.cdiv(T, tT) == 1 and B >= 2:
            tb = pl.cdiv(B, 2)
        grid = (pl.cdiv(B, tb), pl.cdiv(T, tT))
        x_spec = pl.BlockSpec((tb, tT, Hp), lambda bi, ti: (bi, ti, 0))
        m_spec = pl.BlockSpec((tb, 1, Hp), lambda bi, ti: (bi, 0, 0))
    else:
        # Block (tT, tb, Hp); tb sits on the sublane axis.
        tb = B if B <= cap_rows else max(sublane, (cap_rows // sublane) * sublane)
        tT = max(1, min(T, cap_rows // tb))
        if pl.cdiv(B, tb) * pl.cdiv(T, tT) == 1 and T >= 2:
            tT = pl.cdiv(T, 2)   # split the (alignment-free) leading time axis
        grid = (pl.cdiv(B, tb), pl.cdiv(T, tT))
        x_spec = pl.BlockSpec((tT, tb, Hp), lambda bi, ti: (ti, bi, 0))
        m_spec = pl.BlockSpec((1, tb, Hp), lambda bi, ti: (0, bi, 0))

    out = pl.pallas_call(
        _vardrop_kernel,
        out_shape=jax.ShapeDtypeStruct(x_call.shape, x.dtype),
        grid=grid,
        in_specs=[x_spec, m_spec],
        out_specs=x_spec,
        compiler_params=pltpu.CompilerParams(
            # Every grid axis is independent -> shardable across TensorCores on
            # v7x; free/neutral on single-core v5e/v6e.
            dimension_semantics=("parallel", "parallel"),
            vmem_limit_bytes=_VMEM_LIMIT_BYTES,
        ),
        # Footprint-only feature (HBM traffic is unchanged: x read, y written).
        input_output_aliases=({0: 0} if donate_x else {}),
    )(x_call, mask)

    if Hp != H:
        out = out[..., :H]
    return out


def _check_columns(y, x, keep, time_axis, atol_keep=1e-5):
    """Each (batch, hidden) column must be fully kept (y*keep==x) or fully zero."""
    y32 = jnp.asarray(y, jnp.float32)
    x32 = jnp.asarray(x, jnp.float32)
    col_kept = jnp.all(jnp.abs(y32 * keep - x32) < atol_keep, axis=time_axis)
    col_dropped = jnp.all(jnp.abs(y32) < 1e-6, axis=time_axis)
    return bool(jnp.all(col_kept | col_dropped))


if __name__ == "__main__":
    key = jax.random.PRNGKey(0)
    kx, kmask, kx2, kmask2 = jax.random.split(key, 4)
    dropout = 0.3
    keep = 1.0 - dropout

    # --- batch_first=True, f32, lane-aligned H ---
    B, T, H = 4, 16, 128
    x = jax.random.normal(kx, (B, T, H), dtype=jnp.float32)
    y = jax.block_until_ready(
        variational_dropout(x, dropout, kmask, training=True, batch_first=True))
    assert y.shape == x.shape and y.dtype == x.dtype
    assert _check_columns(y, x, keep, time_axis=1), "batch_first=True semantics broken"

    # --- batch_first=False (time-major) path, same mask key ---
    xt = jnp.transpose(x, (1, 0, 2))  # (T, B, H)
    yt = jax.block_until_ready(
        variational_dropout(xt, dropout, kmask, training=True, batch_first=False))
    assert _check_columns(yt, xt, keep, time_axis=0), "batch_first=False semantics broken"

    # --- forced tiny blocks: exercises cdiv grid with partial edge blocks ---
    x_rag = jax.random.normal(kx2, (4, 20, 128), dtype=jnp.float32)
    y_rag = jax.block_until_ready(
        variational_dropout(x_rag, dropout, kmask2, training=True, batch_first=True,
                            target_block_bytes=8192))
    assert y_rag.shape == x_rag.shape
    assert _check_columns(y_rag, x_rag, keep, time_axis=1), "ragged tiling broken"

    # --- bf16 input with H % 128 != 0: exercises lane padding + native-dtype mul ---
    x_bf = jax.random.normal(kx2, (2, 8, 96), dtype=jnp.bfloat16)
    y_bf = jax.block_until_ready(
        variational_dropout(x_bf, dropout, kmask2, training=True, batch_first=True))
    assert y_bf.shape == x_bf.shape and y_bf.dtype == jnp.bfloat16
    assert _check_columns(y_bf, x_bf, keep, time_axis=1, atol_keep=0.06), \
        "bf16 / padded-H path broken"

    # --- eval mode / zero dropout are identity pass-throughs ---
    assert variational_dropout(x, dropout, kmask, training=False) is x
    assert variational_dropout(x, 0.0, kmask, training=True) is x

    print("KERNEL_OK")
</pallas_src>

<mosaic_0001>
module attributes {stable_mosaic.version = 11 : i64} {
  func.func @_vardrop_kernel(%arg0: i32, %arg1: i32, %arg2: memref<2x16x128xf32, #tpu.memory_space<vmem>>, %arg3: memref<2x1x128xf32, #tpu.memory_space<vmem>>, %arg4: memref<2x16x128xf32, #tpu.memory_space<vmem>>) attributes {dimension_semantics = [#tpu.dimension_semantics<parallel>, #tpu.dimension_semantics<parallel>], iteration_bounds = array<i64: 2, 1>, scalar_prefetch = 0 : i64, scratch_operands = 0 : i64, tpu.core_type = #tpu.core_type<tc>, window_params = [{transform_indices = @transform_0, window_bounds = array<i64: 2, 16, 128>}, {transform_indices = @transform_1, window_bounds = array<i64: 2, 1, 128>}, {transform_indices = @transform_2, window_bounds = array<i64: 2, 16, 128>}]} {
    %c0 = arith.constant 0 : index
    %c0_0 = arith.constant 0 : index
    %c0_1 = arith.constant 0 : index
    %0 = vector.load %arg2[%c0, %c0_0, %c0_1] : memref<2x16x128xf32, #tpu.memory_space<vmem>>, vector<2x16x128xf32>
    %c0_2 = arith.constant 0 : index
    %c0_3 = arith.constant 0 : index
    %c0_4 = arith.constant 0 : index
    %1 = vector.load %arg3[%c0_2, %c0_3, %c0_4] : memref<2x1x128xf32, #tpu.memory_space<vmem>>, vector<2x1x128xf32>
    %2 = vector.broadcast %1 : vector<2x1x128xf32> to vector<2x16x128xf32>
    %3 = arith.mulf %0, %2 : vector<2x16x128xf32>
    %c0_5 = arith.constant 0 : index
    %c0_6 = arith.constant 0 : index
    %c0_7 = arith.constant 0 : index
    %4 = vector.load %arg4[%c0_5, %c0_6, %c0_7] : memref<2x16x128xf32, #tpu.memory_space<vmem>>, vector<2x16x128xf32>
    tpu.vector_store %arg4[%c0_5, %c0_6, %c0_7], %3 {strides = array<i32>} : memref<2x16x128xf32, #tpu.memory_space<vmem>>, vector<2x16x128xf32>,
    return
  }
  func.func @transform_0(%arg0: i32, %arg1: i32) -> (i32, i32, i32) {
    %c0_i32 = arith.constant 0 : i32
    %c0_i32_0 = arith.constant 0 : i32
    return %arg0, %arg1, %c0_i32 : i32, i32, i32
  }
  func.func @transform_1(%arg0: i32, %arg1: i32) -> (i32, i32, i32) {
    %c0_i32 = arith.constant 0 : i32
    %c0_i32_0 = arith.constant 0 : i32
    %c0_i32_1 = arith.constant 0 : i32
    return %arg0, %c0_i32, %c0_i32_0 : i32, i32, i32
  }
  func.func @transform_2(%arg0: i32, %arg1: i32) -> (i32, i32, i32) {
    %c0_i32 = arith.constant 0 : i32
    %c0_i32_0 = arith.constant 0 : i32
    return %arg0, %arg1, %c0_i32 : i32, i32, i32
  }
}

</mosaic_0001>

<bundles_post_ra>
// kernel: tpu_custom_call.1
= control target key start
LH: loop header
LB: loop body
LE: loop exit
PB: predicated region body
PF: predicated region fallthrough
CT: control target
= control target key end

     0   :  { %s790_s0 = inlined_call_operand.hbm [shape: f32[4,16,128], index: 0, kind: input, shape index: {}]   ;;  %s791_s1 = inlined_call_operand.hbm [shape: f32[4,1,128], index: 1, kind: input, shape index: {}]   ;;  %s792_s2 = inlined_call_operand.hbm [shape: f32[4,16,128], index: 2, kind: output, shape index: {}]  }
   0x1   :  { %793 = sst [smem:[#allocation11_spill]] %s790_s0 }
   0x2   :  { %7 = vsyncpa [#allocation3], 0 }
   0x3   :  { %9 = vsyncpa [#allocation3 + $0x1], 0 }
   0x4   :  { %10 = vsyncpa [#allocation6], 0 }
   0x5   :  { %12 = vsyncpa [#allocation6 + $0x1], 0 }
   0x6   :  { %13 = vsyncpa [#allocation4], 0 }
   0x7   :  { %15 = vsyncpa [#allocation4 + $0x1], 0  ;;  %s646_s9 = smov 0   ;;  %s648_s10 = smov 0  }
   0x8   :  { %s650_s11 = smov 0   ;;  %s652_s12 = smov 0  }
   0x9   :  { %s654_s13 = smov 0   ;;  %s656_s14 = smov 0  }
   0xa LB: > { %s378_s15 = sadd.s32 4294967295, %s623_s14   ;;  %s379_s16 = sadd.s32 4294967294, %s623_s14   ;;  %s623_s14 = sphi %s656_s14, %s21_s14   ;;  %s619_s13 = sphi %s654_s13, %s804_s13   ;;  %s615_s12 = sphi %s652_s12, %s803_s12   ;;  %s611_s11 = sphi %s650_s11, %s802_s11   ;;  %s607_s10 = sphi %s648_s10, %s801_s10   ;;  %s603_s9 = sphi %s646_s9, %s800_s9  }
   0xb   : > { %s33_s17 = sadd.s32 1, %s619_s13  ;;  %s42_s18 = sadd.s32 1, %s611_s11 }
   0xc   : > { %p35_p0 = scmp.ge.s32.totalorder %s33_s17, 2  ;;  %p49_p1 = scmp.ne.s32.totalorder %s611_s11, %s607_s10 }
   0xd   : > { %p50_p2 = scmp.eq.s32.totalorder %s623_s14, 0  ;;  %p55_p3 = scmp.ne.s32.totalorder %s607_s10, %s603_s9 }
   0xe   : > { %s806_s17 = smov (%p35_p0, %s33_s17), 0  ;;  %p56_p5 = scmp.eq.s32.totalorder %s378_s15, 0 }
   0xf   : > { %p687_p4 = por %p50_p2, %p49_p1  ;;  %s37_s20 = ssub.s32 %s619_s13, %s806_s17 }
  0x10   : > { %p107_p6 = scmp.eq.s32.totalorder %s378_s15, 1  ;;  %p40_p7 = scmp.eq.s32.totalorder %s37_s20, 0 }
  0x11   : > { %p693_p8 = por %p56_p5, %p55_p3  ;;  %p113_p10 = scmp.eq.s32.totalorder %s379_s16, 1 }
  0x12   : > { %p697_p9 = por %p107_p6, %p49_p1  ;;  %p381_p12 = scmp.ge.s32.totalorder %s623_s14, 2 }
  0x13   : > { %s702_s23 = scalar_select %p40_p7, %s611_s11, %s42_s18  }
  0x14   : > { %p704_p11 = por %p113_p10, %p55_p3  ;;  %p419_p13 = scmp.lt.s32.totalorder %s623_s14, 2 }
  0x15   : > { %s711_s25 = sand.u32 1, %s611_s11   ;;  %s399_s27 = sshll.u32 %s619_s13, 5 }
  0x16   : > { %s382_s26 = sshll.u32 %s711_s25, 5  ;;  %s798_s0 = sld [smem:[#allocation11_spill]] }
  0x17   : > { %s137_s3 = scalar_lea.vmem [#allocation2], %s382_s26  ;;  %p720_p0 = pnand %p419_p13, %p687_p4 }
  0x18   : > { %s148_s4 = sshll.u32 %s137_s3, 4  ;;  %p388_p1 = scmp.ge.s32.totalorder %s623_s14, 1  ;;  %s149_s4 = int_to_ptr.vmem [resolvable:$true] %s148_s4 }
  0x19   : > { %s134_s7 = scalar_lea.sflag [#allocation3], %s711_s25  ;;  %s625_s8 = smov 128  }
  0x1a   : > { %s626_s15 = smov 8   ;;  %p177_p2 = scmp.lt.s32.totalorder %s623_s14, 3 }
  0x1b   : > { %s386_s16 = sshll.u32 %s711_s25, 1  ;;  %s387_s18 = sshll.u32 %s619_s13, 1 }
  0x1c   : > { %s145_s30 = scalar_lea.hbm %s798_s0, %s399_s27  ;;  %p178_p3 = pnand %p388_p1, %p177_p2 }
  0x1d   : > { %s146_s5 = sshll.u32 %s145_s30, 4  ;;  %s166_s19 = scalar_lea.hbm %s791_s1, %s387_s18  ;;  %s147_s5 = int_to_ptr.hbm [resolvable:$true] %s146_s5 }
  0x1e   : > { %411 = dma.hbm_to_vmem [thread:$0]  (!%p720_p0), %s147_s5, 512, %s149_s4, %s134_s7, %s625_s8, %s625_s8, %s626_s15  }
  0x1f   : > { %s162_s27 = scalar_lea.vmem [#allocation5], %s386_s16  ;;  %s167_s29 = sshll.u32 %s166_s19, 4  ;;  %s168_s29 = int_to_ptr.hbm [resolvable:$true] %s167_s29 }
  0x20   : > { %s169_s28 = sshll.u32 %s162_s27, 4  ;;  %s159_s30 = scalar_lea.sflag [#allocation6], %s711_s25  ;;  %s170_s28 = int_to_ptr.vmem [resolvable:$true] %s169_s28 }
  0x21   : > { %s627_s3 = smov 16   ;;  %s628_s0 = smov 1  }
  0x22   : > { %414 = dma.hbm_to_vmem [thread:$0]  (!%p720_p0), %s168_s29, 32, %s170_s28, %s159_s30, %s627_s3, %s627_s3, %s628_s0  }
  0x23   : > { %181 = sbr.rel (%p178_p3) target bundleno = 60 (0x3c), region = 28  ;;  %s738_s4 = sand.u32 (!%p178_p3), 1, %s607_s10  }
  0x24   : > { %s389_s5 = sshll.u32 (!%p178_p3), %s738_s4, 5  ;;  %s184_s7 = scalar_lea.sflag (!%p178_p3), [#allocation3], %s738_s4 }
  0x25   : > { %s187_s8 = scalar_lea.vmem (!%p178_p3), [#allocation2], %s389_s5 }
  0x28   : > { %590 = dma.done.wait (%p693_p8), %s184_s7, 512  }
  0x29   : > { %592 = vsyncadd (%p693_p8), %s184_s7, 4294966784  ;;  %s390_s25 = sshll.u32 %s738_s4, 1  ;;  %s194_s0 = scalar_lea.sflag [#allocation6], %s738_s4 }
  0x2a   : > { %s197_s6 = scalar_lea.vmem [#allocation5], %s390_s25 }
  0x2b   : > { %594 = dma.done.wait (%p693_p8), %s194_s0, 32  }
  0x2c   : > { %596 = vsyncadd (%p693_p8), %s194_s0, 4294967264  ;;  %s401_s15 = sshll.u32 %s615_s12, 5  ;;  %v229_v0 = vld [vmem:[%s187_s8] sm:$0xff]  ;;  %s223_s26 = scalar_lea.vmem [#allocation7], %s389_s5  ;;  %v230_v2 = vld [vmem:[%s187_s8 + $0x8] sm:$0xff] }
  0x2d   : > { %s264_s20 = scalar_lea.hbm %s792_s2, %s401_s15  ;;  %v475_v1 = vld [vmem:[%s197_s6] ss:$0 sm:$0xff]  ;;  %s265_s19 = sshll.u32 %s223_s26, 4  ;;  %v231_v3 = vld [vmem:[%s187_s8 + $0x10] sm:$0xff]  ;;  %v476_v6 = vld [vmem:[%s197_s6 + $0x1] ss:$0 sm:$0xff]  ;;  %s266_s19 = int_to_ptr.vmem [resolvable:$true] %s265_s19 }
  0x2e   : > { %v241_v4 = vmul.f32 %v475_v1, %v229_v0  ;;  %v242_v5 = vmul.f32 %v475_v1, %v230_v2  ;;  %v232_v7 = vld [vmem:[%s187_s8 + $0x18] sm:$0xff]  ;;  %s267_s21 = sshll.u32 %s264_s20, 4  ;;  %v243_v8 = vmul.f32 %v476_v6, %v231_v3  ;;  %s250_s12 = scalar_lea.sflag [#allocation4], %s738_s4  ;;  %s268_s21 = int_to_ptr.hbm [resolvable:$true] %s267_s21 }
  0x2f   : > { %v244_v9 = vmul.f32 %v476_v6, %v232_v7  ;;  %s551_s27 = sshra.s32 %s268_s21, 4  ;;  %s557_s3 = scalar_lea.hbm %s792_s2, 64  ;;  %s552_s27 = int_to_ptr.hbm [resolvable:$true] %s551_s27 }
  0x30   : > { %245 = vst [vmem:[%s223_s26] sm:$0xff] %v241_v4  ;;  %s553_s28 = scalar_lea.hbm %s552_s27, 32  ;;  %p558_p7 = scmp.lt.s32.totalorder %s552_s27, %s792_s2 }
  0x31   : > { %246 = vst [vmem:[%s223_s26 + $0x8] sm:$0xff] %v242_v5  ;;  %p554_p4 = scmp.ne.s32.totalorder %s552_s27, %s553_s28  ;;  %p559_p8 = scmp.lt.s32.totalorder %s557_s3, %s553_s28 }
  0x32   : > { %247 = vst [vmem:[%s223_s26 + $0x10] sm:$0xff] %v243_v8 }
  0x33   : > { %248 = vst [vmem:[%s223_s26 + $0x18] sm:$0xff] %v244_v9  ;;  %p555_p5 = pnand %p554_p4, %p697_p9  ;;  %p560_p10 = por %p559_p8, %p558_p7 }
  0x35   : > { %p556_p6 = pneg %p555_p5 }
  0x37   : > { %p561_p13 = pnand %p560_p10, %p556_p6 }
  0x39   : > { %564 = shalt.err (!%p561_p13)
}
  0x3a   : > { %s629_s4 = smov 128   ;;  %s630_s8 = smov 8  }
  0x3b   : > { %406 = dma.vmem_to_hbm [thread:$0]  (%p697_p9), %s266_s19, 512, %s268_s21, %s250_s12, %s629_s4, %s629_s4, %s630_s8  }
  0x3c PF: > { %s282_s25 = sand.u32 1, %s603_s9   ;;  %p416_p0 = pnand %p381_p12, %p704_p11 }
  0x3d   : > { %s283_s0 = scalar_lea.sflag [#allocation4], %s282_s25 }
  0x3e   : > { %p417_p1 = pneg %p416_p0 }
  0x40   : > { %598 = dma.done.wait (%p417_p1), %s283_s0, 512  }
  0x41   : > { %600 = vsyncadd (%p417_p1), %s283_s0, 4294966784  ;;  %s21_s14 = sadd.s32 1, %s623_s14   ;;  %s800_s9 = smov %s607_s10 }
  0x42   : > { %p18_p2 = scmp.ge.s32.totalorder %s21_s14, 4   ;;  %s801_s10 = smov %s611_s11 }
  0x43   : > { %s802_s11 = smov %s702_s23  ;;  %s803_s12 = smov %s619_s13 }
  0x44   : > { %s804_s13 = smov %s806_s17  ;;  %20 = sbr.rel (!%p18_p2) target bundleno = 10 (0xa), region = 86 }
  0x49   :  { %289 = vsyncpa [#allocation3], 1 }
  0x4a   :  { %291 = vsyncpa [#allocation3 + $0x1], 1 }
  0x4b   :  { %292 = vsyncpa [#allocation6], 1 }
  0x4c   :  { %294 = vsyncpa [#allocation6 + $0x1], 1 }
  0x4d   :  { %295 = vsyncpa [#allocation4], 1 }
  0x4e   :  { %297 = vsyncpa [#allocation4 + $0x1], 1 }

</bundles_post_ra>
